<compile_context>
chip_gen: v7x
topology: tpu7x:2x2x1
jax: 0.10.0
libtpu: 0.0.40
codegen_flags: <defaults>
</compile_context>

<pallas_src>
import jax
import jax.numpy as jnp
import numpy as np
from jax.experimental import pallas as pl
from jax.experimental.pallas import tpu as pltpu

NEG_SLOPE = 0.3
BN_EPS = 1e-5


# --------------------------- weight lowering ---------------------------------

def _pack_weights(w, W_in, W_out, sw, pw, n_batch):
    """Fold W-axis taps/stride/zero-pad, block-diagonal batch packing and the
    KH-tap concatenation of a 2-D conv into one dense matmul operand.

    w: (KH, KW, C_in, C_out)  (HWIO, torch cross-correlation semantics)
    returns: (n_batch*W_in*C_in, KH*n_batch*W_out*C_out) with
      [:, kh*Lout + n*W_out*C_out + ow*C_out + co] summed against lane
      n*W_in*C_in + w*C_in + ci giving the kh-th H-tap of the conv output.
    """
    KH, KW, C_in, C_out = w.shape
    ow = jnp.arange(W_out)[:, None, None]
    wc = jnp.arange(W_in)[None, :, None]
    kw = jnp.arange(KW)[None, None, :]
    onehot = ((wc + pw) == (ow * sw + kw)).astype(w.dtype)       # (W_out, W_in, KW)
    # NOTE: output index order "...oc" (W_out-major, C_out-minor).  The previous
    # "...co" ordering was the correctness bug.
    wl = jnp.einsum("owk,hkic->hwioc", onehot, w)                # (KH, W_in, C_in, W_out, C_out)
    wl = wl.reshape(KH, W_in * C_in, W_out * C_out)
    # block-diagonal over the batch (batch packed on the lane axis)
    eye = jnp.eye(n_batch, dtype=w.dtype)
    wbd = jnp.einsum("hkm,ab->hakbm", wl, eye)                   # (KH, n, K, n, M)
    wbd = wbd.reshape(KH, n_batch * W_in * C_in, n_batch * W_out * C_out)
    # concatenate the KH taps along the output (lane) dim -> one matmul per conv
    return jnp.moveaxis(wbd, 0, 1).reshape(
        n_batch * W_in * C_in, KH * n_batch * W_out * C_out)


# ------------------------------ fused kernel ---------------------------------

def _make_block_kernel(*, H, H_out, KH, sh, ph, L_in, L_out,
                       neg_slope, first, downsample):
    f32 = jnp.float32

    def kernel(*refs):
        it = iter(refs)
        x_ref = next(it)                 # (H, L_in)
        w1_ref = next(it)                # (L_in,  KH*L_out)  (bn2 scale folded in)
        w2_ref = next(it)                # (L_out, KH*L_out)
        if downsample:
            wd_ref = next(it)            # (L_in,  KH*L_out)
        vec_ref = next(it)               # (4, max(L_in, L_out)) stacked per-lane vectors
        o_ref = next(it)                 # (H_out, L_out)

        x = x_ref[...]
        vecs = vec_ref[...]

        # ---- bn1 + LeakyReLU (zero halo handled by the weight lowering)
        if first:
            xa = x
        else:
            t = x * vecs[0:1, :L_in] + vecs[1:2, :L_in]
            xa = jnp.where(t >= 0.0, t, neg_slope * t)

        # ---- big independent matmuls first (K folds W taps/stride/pad,
        #      N is the KH-tap concatenation) -> no sel->weight serial chain.
        z1 = jnp.dot(xa, w1_ref[...], preferred_element_type=f32)   # (H, KH*L_out)
        if downsample:
            zd = jnp.dot(x, wd_ref[...], preferred_element_type=f32)

        # ---- H-axis taps/stride/zero-pad of the strided convs as tiny 0/1
        #      row-selection matmuls; built ONCE and shared by both convs.
        r = jax.lax.broadcasted_iota(jnp.int32, (H_out, H), 0)
        c = jax.lax.broadcasted_iota(jnp.int32, (H_out, H), 1)

        y = jnp.zeros((H_out, L_out), f32)
        ident = jnp.zeros((H_out, L_out), f32) if downsample else x
        for kh in range(KH):
            sel = (c == r * sh + (kh - ph)).astype(f32)             # (H_out, H)
            y = y + jnp.dot(sel, z1[:, kh * L_out:(kh + 1) * L_out],
                            preferred_element_type=f32)
            if downsample:
                ident = ident + jnp.dot(sel, zd[:, kh * L_out:(kh + 1) * L_out],
                                        preferred_element_type=f32)

        # ---- conv1 epilogue: bias (bn2 folded) + LeakyReLU
        y = y + vecs[2:3, :L_out]
        y = jnp.where(y >= 0.0, y, neg_slope * y)

        # ---- conv2 (stride 1): one MXU matmul, then the KH taps as static
        #      sublane shift-adds with explicit zero edge rows (off the MXU).
        z2 = jnp.dot(y, w2_ref[...], preferred_element_type=f32)    # (H_out, KH*L_out)
        out = jnp.zeros((H_out, L_out), f32)
        for kh in range(KH):
            d = kh - ph                                             # out[r] += z2[r+d]
            blk = z2[:, kh * L_out:(kh + 1) * L_out]
            if d == 0:
                shifted = blk
            elif d > 0:
                pad = jnp.zeros((d, L_out), f32)
                shifted = jnp.concatenate([blk[d:, :], pad], axis=0)
            else:
                pad = jnp.zeros((-d, L_out), f32)
                shifted = jnp.concatenate([pad, blk[:d, :]], axis=0)
            out = out + shifted

        # ---- combined bias (conv2_b [+ convd_b]) + residual add
        out = out + vecs[3:4, :L_out] + ident
        o_ref[...] = out.astype(o_ref.dtype)

    return kernel


# --------------------------- Residual block ----------------------------------

def residual_block_forward(x_nchw, params, strides, first=False, downsample=False):
    """Forward pass of Residual_block (inference-mode BN).  NCHW in / NCHW out."""
    N, C_in, H, W = x_nchw.shape
    sh, sw = strides
    KH, KW, _, C_out = params["conv1_w"].shape
    ph, pw = 1, 3                                     # module's fixed padding

    H_out = (H + 2 * ph - KH) // sh + 1
    W_out = (W + 2 * pw - KW) // sw + 1
    # conv2 is stride 1; the residual add requires it to be shape preserving.
    assert (H_out + 2 * ph - KH) + 1 == H_out
    assert (W_out + 2 * pw - KW) + 1 == W_out
    if not downsample:
        assert (sh, sw) == (1, 1) and C_in == C_out and H_out == H and W_out == W

    L_in = N * W * C_in
    L_out = N * W_out * C_out
    L_max = max(L_in, L_out)

    # NCHW -> one lane-dense slab (H, N*W*C): batch packed block-diagonally on
    # the lane axis (lane = n*W*C + w*C + c) -> single grid step, 128-lane output.
    x = jnp.transpose(x_nchw, (2, 0, 3, 1)).reshape(H, L_in).astype(jnp.float32)

    # BN folding (inference / running-stats form).
    s2 = params["bn2_gamma"] / jnp.sqrt(params["bn2_var"] + BN_EPS)
    b2 = params["bn2_beta"] - params["bn2_mean"] * s2

    # Fold bn2's per-channel scale straight into conv1's weights.
    w1 = params["conv1_w"] * s2[None, None, None, :]
    w1c = _pack_weights(w1, W, W_out, sw, pw, N)
    w2c = _pack_weights(params["conv2_w"], W_out, W_out, 1, pw, N)

    out_bias = params["conv2_b"]
    if downsample:
        wdc = _pack_weights(params["convd_w"], W, W_out, sw, pw, N)
        out_bias = out_bias + params["convd_b"]

    def lane_vec(v, reps, width):
        return jnp.pad(jnp.tile(v, reps), (0, L_max - width))

    if first:
        v0 = jnp.zeros((L_max,), jnp.float32)
        v1 = jnp.zeros((L_max,), jnp.float32)
    else:
        s1 = params["bn1_gamma"] / jnp.sqrt(params["bn1_var"] + BN_EPS)
        b1 = params["bn1_beta"] - params["bn1_mean"] * s1
        v0 = lane_vec(s1, N * W, L_in)
        v1 = lane_vec(b1, N * W, L_in)
    v2 = lane_vec(params["conv1_b"] * s2 + b2, N * W_out, L_out)
    v3 = lane_vec(out_bias, N * W_out, L_out)
    vecs = jnp.stack([v0, v1, v2, v3], axis=0)        # ONE small per-lane-vector input

    args = [x, w1c, w2c] + ([wdc] if downsample else []) + [vecs]

    kernel = _make_block_kernel(H=H, H_out=H_out, KH=KH, sh=sh, ph=ph,
                                L_in=L_in, L_out=L_out, neg_slope=NEG_SLOPE,
                                first=first, downsample=downsample)

    vmem = pltpu.MemorySpace.VMEM
    out = pl.pallas_call(
        kernel,
        out_shape=jax.ShapeDtypeStruct((H_out, L_out), jnp.float32),
        in_specs=[pl.BlockSpec(memory_space=vmem) for _ in args],
        out_specs=pl.BlockSpec(memory_space=vmem),
    )(*args)

    # (H_out, N*W_out*C_out) -> NCHW
    return jnp.transpose(out.reshape(H_out, N, W_out, C_out), (1, 3, 0, 2))


# --------------------------- pure-JAX reference -------------------------------

def _conv_ref(x, w, b, padding, stride):
    y = jax.lax.conv_general_dilated(
        x, w, window_strides=stride,
        padding=((padding[0], padding[0]), (padding[1], padding[1])),
        dimension_numbers=("NHWC", "HWIO", "NHWC"))
    return y + b.reshape(1, 1, 1, -1)


def residual_block_ref(x_nchw, params, strides, first=False, downsample=False):
    x = jnp.transpose(x_nchw, (0, 2, 3, 1))
    identity = x
    if not first:
        s1 = params["bn1_gamma"] / jnp.sqrt(params["bn1_var"] + BN_EPS)
        b1 = params["bn1_beta"] - params["bn1_mean"] * s1
        out = x * s1 + b1
        out = jnp.where(out >= 0, out, NEG_SLOPE * out)
    else:
        out = x
    out = _conv_ref(out, params["conv1_w"], params["conv1_b"], (1, 3), strides)
    s2 = params["bn2_gamma"] / jnp.sqrt(params["bn2_var"] + BN_EPS)
    b2 = params["bn2_beta"] - params["bn2_mean"] * s2
    out = out * s2 + b2
    out = jnp.where(out >= 0, out, NEG_SLOPE * out)
    out = _conv_ref(out, params["conv2_w"], params["conv2_b"], (1, 3), (1, 1))
    if downsample:
        identity = _conv_ref(identity, params["convd_w"], params["convd_b"], (1, 3), strides)
    return jnp.transpose(out + identity, (0, 3, 1, 2))


# --------------------------- deterministic params -----------------------------

def init_params(key, nb_filts, kernels, first, downsample):
    c_in, c_out = nb_filts
    kh, kw = kernels
    keys = jax.random.split(key, 14)

    def w_init(k, shape, fan_in):
        return jax.random.normal(k, shape, jnp.float32) / np.sqrt(float(fan_in))

    p = {}
    if not first:
        p["bn1_gamma"] = 1.0 + 0.1 * jax.random.normal(keys[0], (c_in,), jnp.float32)
        p["bn1_beta"] = 0.1 * jax.random.normal(keys[1], (c_in,), jnp.float32)
        p["bn1_mean"] = 0.1 * jax.random.normal(keys[2], (c_in,), jnp.float32)
        p["bn1_var"] = jax.random.uniform(keys[3], (c_in,), jnp.float32, 0.5, 1.5)
    p["conv1_w"] = w_init(keys[4], (kh, kw, c_in, c_out), kh * kw * c_in)
    p["conv1_b"] = 0.1 * jax.random.normal(keys[5], (c_out,), jnp.float32)
    p["bn2_gamma"] = 1.0 + 0.1 * jax.random.normal(keys[6], (c_out,), jnp.float32)
    p["bn2_beta"] = 0.1 * jax.random.normal(keys[7], (c_out,), jnp.float32)
    p["bn2_mean"] = 0.1 * jax.random.normal(keys[8], (c_out,), jnp.float32)
    p["bn2_var"] = jax.random.uniform(keys[9], (c_out,), jnp.float32, 0.5, 1.5)
    p["conv2_w"] = w_init(keys[10], (kh, kw, c_out, c_out), kh * kw * c_out)
    p["conv2_b"] = 0.1 * jax.random.normal(keys[11], (c_out,), jnp.float32)
    if downsample:
        p["convd_w"] = w_init(keys[12], (kh, kw, c_in, c_out), kh * kw * c_in)
        p["convd_b"] = 0.1 * jax.random.normal(keys[13], (c_out,), jnp.float32)
    return p


# --------------------------------- main ---------------------------------------

if __name__ == "__main__":
    nb_filts = [4, 8]          # [in_channels, out_channels]
    kernels = (3, 7)           # matches padding (1, 3) so conv2 is shape-preserving
    strides = (2, 2)
    first = False
    downsample = True

    key = jax.random.PRNGKey(0)
    kx, kp = jax.random.split(key)
    x = jax.random.normal(kx, (2, nb_filts[0], 16, 16), jnp.float32)   # NCHW

    params = init_params(kp, nb_filts, kernels, first, downsample)

    fwd = jax.jit(lambda xx, pp: residual_block_forward(
        xx, pp, strides, first=first, downsample=downsample))
    out = jax.block_until_ready(fwd(x, params))

    ref = residual_block_ref(x, params, strides, first=first, downsample=downsample)
    np.testing.assert_allclose(np.asarray(out), np.asarray(ref), rtol=2e-4, atol=2e-4)

    assert out.shape == (2, nb_filts[1], 8, 8)
    print("KERNEL_OK")
</pallas_src>

<mosaic_0001>
module attributes {stable_mosaic.version = 11 : i64} {
  func.func @kernel(%arg0: memref<16x128xf32, #tpu.memory_space<vmem>>, %arg1: memref<128x384xf32, #tpu.memory_space<vmem>>, %arg2: memref<128x384xf32, #tpu.memory_space<vmem>>, %arg3: memref<128x384xf32, #tpu.memory_space<vmem>>, %arg4: memref<4x128xf32, #tpu.memory_space<vmem>>, %arg5: memref<8x128xf32, #tpu.memory_space<vmem>>) attributes {dimension_semantics = [], scalar_prefetch = 0 : i64, scratch_operands = 0 : i64, tpu.core_type = #tpu.core_type<tc>} {
    %c0 = arith.constant 0 : index
    %c0_0 = arith.constant 0 : index
    %0 = vector.load %arg0[%c0, %c0_0] : memref<16x128xf32, #tpu.memory_space<vmem>>, vector<16x128xf32>
    %c0_1 = arith.constant 0 : index
    %c0_2 = arith.constant 0 : index
    %1 = vector.load %arg4[%c0_1, %c0_2] : memref<4x128xf32, #tpu.memory_space<vmem>>, vector<4x128xf32>
    %2 = vector.extract_strided_slice %1 {offsets = [0, 0], sizes = [1, 128], strides = [1, 1]} : vector<4x128xf32> to vector<1x128xf32>
    %3 = vector.broadcast %2 : vector<1x128xf32> to vector<16x128xf32>
    %4 = arith.mulf %0, %3 : vector<16x128xf32>
    %5 = vector.extract_strided_slice %1 {offsets = [1, 0], sizes = [1, 128], strides = [1, 1]} : vector<4x128xf32> to vector<1x128xf32>
    %6 = vector.broadcast %5 : vector<1x128xf32> to vector<16x128xf32>
    %7 = arith.addf %4, %6 : vector<16x128xf32>
    %cst = arith.constant 0.000000e+00 : f32
    %8 = vector.broadcast %cst : f32 to vector<16x128xf32>
    %9 = arith.cmpf oge, %7, %8 : vector<16x128xf32>
    %cst_3 = arith.constant 3.000000e-01 : f32
    %10 = vector.broadcast %cst_3 : f32 to vector<16x128xf32>
    %11 = arith.mulf %10, %7 : vector<16x128xf32>
    %12 = arith.select %9, %7, %11 : vector<16x128xi1>, vector<16x128xf32>
    %c0_4 = arith.constant 0 : index
    %c0_5 = arith.constant 0 : index
    %13 = vector.load %arg1[%c0_4, %c0_5] : memref<128x384xf32, #tpu.memory_space<vmem>>, vector<128x384xf32>
    %cst_6 = arith.constant dense<0.000000e+00> : vector<16x384xf32>
    %14 = tpu.matmul %12, %13, %cst_6 {dimension_numbers = #tpu.dot_dimension_numbers<[1], [0], [0], [1], [0, 0, 1, 1], [], []>} : vector<16x128xf32>, vector<128x384xf32>, vector<16x384xf32> -> vector<16x384xf32>
    %c0_7 = arith.constant 0 : index
    %c0_8 = arith.constant 0 : index
    %15 = vector.load %arg3[%c0_7, %c0_8] : memref<128x384xf32, #tpu.memory_space<vmem>>, vector<128x384xf32>
    %cst_9 = arith.constant dense<0.000000e+00> : vector<16x384xf32>
    %16 = tpu.matmul %0, %15, %cst_9 {dimension_numbers = #tpu.dot_dimension_numbers<[1], [0], [0], [1], [0, 0, 1, 1], [], []>} : vector<16x128xf32>, vector<128x384xf32>, vector<16x384xf32> -> vector<16x384xf32>
    %17 = tpu.iota {dimensions = array<i32: 0>} : vector<8x16xi32>
    %18 = tpu.iota {dimensions = array<i32: 1>} : vector<8x16xi32>
    %cst_10 = arith.constant 0.000000e+00 : f32
    %19 = vector.broadcast %cst_10 : f32 to vector<8x128xf32>
    %cst_11 = arith.constant 0.000000e+00 : f32
    %20 = vector.broadcast %cst_11 : f32 to vector<8x128xf32>
    %c2_i32 = arith.constant 2 : i32
    %21 = vector.broadcast %c2_i32 : i32 to vector<8x16xi32>
    %22 = arith.muli %17, %21 : vector<8x16xi32>
    %c-1_i32 = arith.constant -1 : i32
    %23 = vector.broadcast %c-1_i32 : i32 to vector<8x16xi32>
    %24 = arith.addi %22, %23 : vector<8x16xi32>
    %25 = arith.cmpi eq, %18, %24 : vector<8x16xi32>
    %26 = arith.extui %25 : vector<8x16xi1> to vector<8x16xi32>
    %27 = arith.sitofp %26 : vector<8x16xi32> to vector<8x16xf32>
    %28 = vector.extract_strided_slice %14 {offsets = [0, 0], sizes = [16, 128], strides = [1, 1]} : vector<16x384xf32> to vector<16x128xf32>
    %cst_12 = arith.constant dense<0.000000e+00> : vector<8x128xf32>
    %29 = tpu.matmul %27, %28, %cst_12 {dimension_numbers = #tpu.dot_dimension_numbers<[1], [0], [0], [1], [0, 0, 1, 1], [], []>} : vector<8x16xf32>, vector<16x128xf32>, vector<8x128xf32> -> vector<8x128xf32>
    %30 = arith.addf %19, %29 : vector<8x128xf32>
    %31 = vector.extract_strided_slice %16 {offsets = [0, 0], sizes = [16, 128], strides = [1, 1]} : vector<16x384xf32> to vector<16x128xf32>
    %cst_13 = arith.constant dense<0.000000e+00> : vector<8x128xf32>
    %32 = tpu.matmul %27, %31, %cst_13 {dimension_numbers = #tpu.dot_dimension_numbers<[1], [0], [0], [1], [0, 0, 1, 1], [], []>} : vector<8x16xf32>, vector<16x128xf32>, vector<8x128xf32> -> vector<8x128xf32>
    %33 = arith.addf %20, %32 : vector<8x128xf32>
    %c2_i32_14 = arith.constant 2 : i32
    %34 = vector.broadcast %c2_i32_14 : i32 to vector<8x16xi32>
    %35 = arith.muli %17, %34 : vector<8x16xi32>
    %c0_i32 = arith.constant 0 : i32
    %36 = vector.broadcast %c0_i32 : i32 to vector<8x16xi32>
    %37 = arith.addi %35, %36 : vector<8x16xi32>
    %38 = arith.cmpi eq, %18, %37 : vector<8x16xi32>
    %39 = arith.extui %38 : vector<8x16xi1> to vector<8x16xi32>
    %40 = arith.sitofp %39 : vector<8x16xi32> to vector<8x16xf32>
    %41 = vector.extract_strided_slice %14 {offsets = [0, 128], sizes = [16, 128], strides = [1, 1]} : vector<16x384xf32> to vector<16x128xf32>
    %cst_15 = arith.constant dense<0.000000e+00> : vector<8x128xf32>
    %42 = tpu.matmul %40, %41, %cst_15 {dimension_numbers = #tpu.dot_dimension_numbers<[1], [0], [0], [1], [0, 0, 1, 1], [], []>} : vector<8x16xf32>, vector<16x128xf32>, vector<8x128xf32> -> vector<8x128xf32>
    %43 = arith.addf %30, %42 : vector<8x128xf32>
    %44 = vector.extract_strided_slice %16 {offsets = [0, 128], sizes = [16, 128], strides = [1, 1]} : vector<16x384xf32> to vector<16x128xf32>
    %cst_16 = arith.constant dense<0.000000e+00> : vector<8x128xf32>
    %45 = tpu.matmul %40, %44, %cst_16 {dimension_numbers = #tpu.dot_dimension_numbers<[1], [0], [0], [1], [0, 0, 1, 1], [], []>} : vector<8x16xf32>, vector<16x128xf32>, vector<8x128xf32> -> vector<8x128xf32>
    %46 = arith.addf %33, %45 : vector<8x128xf32>
    %c2_i32_17 = arith.constant 2 : i32
    %47 = vector.broadcast %c2_i32_17 : i32 to vector<8x16xi32>
    %48 = arith.muli %17, %47 : vector<8x16xi32>
    %c1_i32 = arith.constant 1 : i32
    %49 = vector.broadcast %c1_i32 : i32 to vector<8x16xi32>
    %50 = arith.addi %48, %49 : vector<8x16xi32>
    %51 = arith.cmpi eq, %18, %50 : vector<8x16xi32>
    %52 = arith.extui %51 : vector<8x16xi1> to vector<8x16xi32>
    %53 = arith.sitofp %52 : vector<8x16xi32> to vector<8x16xf32>
    %54 = vector.extract_strided_slice %14 {offsets = [0, 256], sizes = [16, 128], strides = [1, 1]} : vector<16x384xf32> to vector<16x128xf32>
    %cst_18 = arith.constant dense<0.000000e+00> : vector<8x128xf32>
    %55 = tpu.matmul %53, %54, %cst_18 {dimension_numbers = #tpu.dot_dimension_numbers<[1], [0], [0], [1], [0, 0, 1, 1], [], []>} : vector<8x16xf32>, vector<16x128xf32>, vector<8x128xf32> -> vector<8x128xf32>
    %56 = arith.addf %43, %55 : vector<8x128xf32>
    %57 = vector.extract_strided_slice %16 {offsets = [0, 256], sizes = [16, 128], strides = [1, 1]} : vector<16x384xf32> to vector<16x128xf32>
    %cst_19 = arith.constant dense<0.000000e+00> : vector<8x128xf32>
    %58 = tpu.matmul %53, %57, %cst_19 {dimension_numbers = #tpu.dot_dimension_numbers<[1], [0], [0], [1], [0, 0, 1, 1], [], []>} : vector<8x16xf32>, vector<16x128xf32>, vector<8x128xf32> -> vector<8x128xf32>
    %59 = arith.addf %46, %58 : vector<8x128xf32>
    %60 = vector.extract_strided_slice %1 {offsets = [2, 0], sizes = [1, 128], strides = [1, 1]} : vector<4x128xf32> to vector<1x128xf32>
    %61 = vector.broadcast %60 : vector<1x128xf32> to vector<8x128xf32>
    %62 = arith.addf %56, %61 : vector<8x128xf32>
    %cst_20 = arith.constant 0.000000e+00 : f32
    %63 = vector.broadcast %cst_20 : f32 to vector<8x128xf32>
    %64 = arith.cmpf oge, %62, %63 : vector<8x128xf32>
    %cst_21 = arith.constant 3.000000e-01 : f32
    %65 = vector.broadcast %cst_21 : f32 to vector<8x128xf32>
    %66 = arith.mulf %65, %62 : vector<8x128xf32>
    %67 = arith.select %64, %62, %66 : vector<8x128xi1>, vector<8x128xf32>
    %c0_22 = arith.constant 0 : index
    %c0_23 = arith.constant 0 : index
    %68 = vector.load %arg2[%c0_22, %c0_23] : memref<128x384xf32, #tpu.memory_space<vmem>>, vector<128x384xf32>
    %cst_24 = arith.constant dense<0.000000e+00> : vector<8x384xf32>
    %69 = tpu.matmul %67, %68, %cst_24 {dimension_numbers = #tpu.dot_dimension_numbers<[1], [0], [0], [1], [0, 0, 1, 1], [], []>} : vector<8x128xf32>, vector<128x384xf32>, vector<8x384xf32> -> vector<8x384xf32>
    %cst_25 = arith.constant 0.000000e+00 : f32
    %70 = vector.broadcast %cst_25 : f32 to vector<8x128xf32>
    %71 = vector.extract_strided_slice %69 {offsets = [0, 0], sizes = [8, 128], strides = [1, 1]} : vector<8x384xf32> to vector<8x128xf32>
    %cst_26 = arith.constant 0.000000e+00 : f32
    %72 = vector.broadcast %cst_26 : f32 to vector<1x128xf32>
    %73 = vector.extract_strided_slice %71 {offsets = [0, 0], sizes = [7, 128], strides = [1, 1]} : vector<8x128xf32> to vector<7x128xf32>
    %74 = tpu.concatenate %72, %73 in 0 : vector<1x128xf32>, vector<7x128xf32> -> vector<8x128xf32>
    %75 = arith.addf %70, %74 : vector<8x128xf32>
    %76 = vector.extract_strided_slice %69 {offsets = [0, 128], sizes = [8, 128], strides = [1, 1]} : vector<8x384xf32> to vector<8x128xf32>
    %77 = arith.addf %75, %76 : vector<8x128xf32>
    %78 = vector.extract_strided_slice %69 {offsets = [0, 256], sizes = [8, 128], strides = [1, 1]} : vector<8x384xf32> to vector<8x128xf32>
    %cst_27 = arith.constant 0.000000e+00 : f32
    %79 = vector.broadcast %cst_27 : f32 to vector<1x128xf32>
    %80 = vector.extract_strided_slice %78 {offsets = [1, 0], sizes = [7, 128], strides = [1, 1]} : vector<8x128xf32> to vector<7x128xf32>
    %81 = tpu.concatenate %80, %79 in 0 : vector<7x128xf32>, vector<1x128xf32> -> vector<8x128xf32>
    %82 = arith.addf %77, %81 : vector<8x128xf32>
    %83 = vector.extract_strided_slice %1 {offsets = [3, 0], sizes = [1, 128], strides = [1, 1]} : vector<4x128xf32> to vector<1x128xf32>
    %84 = vector.broadcast %83 : vector<1x128xf32> to vector<8x128xf32>
    %85 = arith.addf %82, %84 : vector<8x128xf32>
    %86 = arith.addf %85, %59 : vector<8x128xf32>
    %c0_28 = arith.constant 0 : index
    %c0_29 = arith.constant 0 : index
    %87 = vector.load %arg5[%c0_28, %c0_29] : memref<8x128xf32, #tpu.memory_space<vmem>>, vector<8x128xf32>
    tpu.vector_store %arg5[%c0_28, %c0_29], %86 {strides = array<i32>} : memref<8x128xf32, #tpu.memory_space<vmem>>, vector<8x128xf32>,
    return
  }
}

</mosaic_0001>

<bundles_post_ra>
// kernel: tile.38
= control target key start
LH: loop header
LB: loop body
LE: loop exit
PB: predicated region body
PF: predicated region fallthrough
CT: control target
= control target key end

     0   :  { %s28_s0 = inlined_call_operand.vmem [shape: f32[8], index: 0, kind: input, shape index: {}]   ;;  %s29_s1 = inlined_call_operand.vmem [shape: f32[16,8], index: 1, kind: output, shape index: {}]  }
   0x1   :  { %v4_v0 = vld [vmem:[%s28_s0] ss:$0 sm:$0xff] }
   0x2   :  { %5 = vst [vmem:[%s29_s1] sm:$0xff] %v4_v0  ;;  %8 = vst [vmem:[%s29_s1 + $0x8] sm:$0xff] %v4_v0 }

// kernel: tile.28
= control target key start
LH: loop header
LB: loop body
LE: loop exit
PB: predicated region body
PF: predicated region fallthrough
CT: control target
= control target key end

     0   :  { %s40_s0 = inlined_call_operand.vmem [shape: f32[4], index: 0, kind: input, shape index: {}]   ;;  %s41_s1 = inlined_call_operand.vmem [shape: f32[32,4], index: 1, kind: output, shape index: {}]  }
   0x1   :  { %v4_v0 = vld [vmem:[%s40_s0] ss:$0 sm:$0xff] }
   0x2   :  { %5 = vst [vmem:[%s41_s1] sm:$0xff] %v4_v0  ;;  %12 = vst [vmem:[%s41_s1 + $0x8] sm:$0xff] %v4_v0 }
   0x3   :  { %13 = vst [vmem:[%s41_s1 + $0x10] sm:$0xff] %v4_v0  ;;  %14 = vst [vmem:[%s41_s1 + $0x18] sm:$0xff] %v4_v0 }

// kernel: _lambda_.1
= control target key start
LH: loop header
LB: loop body
LE: loop exit
PB: predicated region body
PF: predicated region fallthrough
CT: control target
= control target key end

     0   :  { %v1546_v3 = vmov 0.0   ;;  %v23_v19 = vlaneseq  ;;  %vm1548_vm2 = vmmov 0   ;;  %vm453_vm5 = vcmask 130048   ;;  %s2102_s1 = inlined_call_operand.vmem [shape: f32[128,384], index: 1, kind: input, shape index: {}]   ;;  %s2103_s0 = inlined_call_operand.vmem [shape: f32[16,128], index: 0, kind: input, shape index: {}]   ;;  %s2104_s4 = inlined_call_operand.vmem [shape: f32[4,128], index: 4, kind: input, shape index: {}]   ;;  %s2105_s3 = inlined_call_operand.vmem [shape: f32[128,384], index: 3, kind: input, shape index: {}]   ;;  %s2106_s2 = inlined_call_operand.vmem [shape: f32[128,384], index: 2, kind: input, shape index: {}]   ;;  %s2107_s5 = inlined_call_operand.vmem [shape: f32[8,128], index: 5, kind: output, shape index: {}]  }
   0x1   :  { %v42_v0 = vld [vmem:[%s2102_s1 + $0x8] sm:$0xff]  ;;  %v45_v1 = vld [vmem:[%s2102_s1 + $0x20] sm:$0xff]  ;;  %153 = vmatprep.mubr.f32.mxu0 %v1546_v3  ;;  %v44_v5 = vld [vmem:[%s2102_s1 + $0x18] sm:$0xff]  ;;  %vm1089_vm8 = vcmask 1040384   ;;  %vm1096_vm9 = vcmask 1046528  }
   0x2   :  { %v41_v2 = vld [vmem:[%s2102_s1] sm:$0xff]  ;;  %v1337_v4 = vpack.c.bf16 %v45_v1, %v42_v0  ;;  %v48_v6 = vld [vmem:[%s2102_s1 + $0x38] sm:$0xff]  ;;  %v51_v7 = vld [vmem:[%s2102_s1 + $0x50] sm:$0xff]  ;;  %v1644_v32 = vshrl.u32 %v23_v19, 7 }
   0x3   :  { %v1339_v8 = vpack.c.bf16 %v44_v5, %v41_v2  ;;  %v1341_v9 = vpack.c.bf16 %v51_v7, %v48_v6  ;;  %v47_v10 = vld [vmem:[%s2102_s1 + $0x30] sm:$0xff]  ;;  %v50_v11 = vld [vmem:[%s2102_s1 + $0x48] sm:$0xff]  ;;  %v57_v15 = vld [vmem:[%s2102_s1 + $0x80] sm:$0xff] }
   0x4   :  { %v43_v12 = vld [vmem:[%s2102_s1 + $0x10] sm:$0xff]  ;;  %1338 = vmatprep.subr.bf16.mxu0 %v1337_v4  ;;  %v46_v13 = vld [vmem:[%s2102_s1 + $0x28] sm:$0xff]  ;;  %v1343_v16 = vpack.c.bf16 %v50_v11, %v47_v10  ;;  %v49_v18 = vld [vmem:[%s2102_s1 + $0x40] sm:$0xff]  ;;  %v25_v43 = vsub.s32 0, %v1644_v32  ;;  %v31_v44 = vsub.s32 1, %v1644_v32 }
   0x5   :  { %v54_v14 = vld [vmem:[%s2102_s1 + $0x68] sm:$0xff]  ;;  %1340 = vmatpush1.bf16.msra.mxu0 %v1339_v8  ;;  %v1369_v17 = vpack.c.bf16 %v46_v13, %v43_v12  ;;  %v53_v21 = vld [vmem:[%s2102_s1 + $0x60] sm:$0xff]  ;;  %v56_v22 = vld [vmem:[%s2102_s1 + $0x78] sm:$0xff] }
   0x6   :  { %1342 = vmatprep.subr.bf16.mxu0 %v1341_v9  ;;  %v1345_v20 = vpack.c.bf16 %v57_v15, %v54_v14  ;;  %v52_v23 = vld [vmem:[%s2102_s1 + $0x58] sm:$0xff]  ;;  %v63_v26 = vld [vmem:[%s2102_s1 + $0xb0] sm:$0xff]  ;;  %v58_v28 = vld [vmem:[%s2102_s1 + $0x88] sm:$0xff]  ;;  %v1347_v29 = vpack.c.bf16 %v56_v22, %v53_v21 }
   0x7   :  { %1370 = vmatprep.subr.bf16.mxu1 %v1369_v17  ;;  %v1373_v24 = vpack.c.bf16 %v52_v23, %v49_v18  ;;  %v60_v25 = vld [vmem:[%s2102_s1 + $0x98] sm:$0xff]  ;;  %v55_v27 = vld [vmem:[%s2102_s1 + $0x70] sm:$0xff]  ;;  %v62_v34 = vld [vmem:[%s2102_s1 + $0xa8] sm:$0xff] }
   0x8   :  { %1372 = vmatpush3.bf16.msra.mxu1 %v1369_v17  ;;  %v59_v30 = vld [vmem:[%s2102_s1 + $0x90] sm:$0xff]  ;;  %v1377_v31 = vpack.c.bf16 %v58_v28, %v55_v27  ;;  %v1349_v33 = vpack.c.bf16 %v63_v26, %v60_v25  ;;  %v61_v35 = vld [vmem:[%s2102_s1 + $0xa0] sm:$0xff]  ;;  %v64_v36 = vld [vmem:[%s2102_s1 + $0xb8] sm:$0xff] }
   0x9   :  { %1344 = vmatpush1.bf16.msra.mxu0 %v1343_v16  ;;  %1374 = vmatprep.subr.bf16.mxu1 %v1373_v24  ;;  %v66_v37 = vld [vmem:[%s2102_s1 + $0xc8] sm:$0xff]  ;;  %v69_v38 = vld [vmem:[%s2102_s1 + $0xe0] sm:$0xff]  ;;  %v1351_v39 = vpack.c.bf16 %v62_v34, %v59_v30  ;;  %v68_v41 = vld [vmem:[%s2102_s1 + $0xd8] sm:$0xff]  ;;  %v1381_v42 = vpack.c.bf16 %v64_v36, %v61_v35 }
   0xa   :  { %1346 = vmatprep.subr.bf16.mxu0 %v1345_v20  ;;  %v65_v40 = vld [vmem:[%s2102_s1 + $0xc0] sm:$0xff]  ;;  %v1353_v45 = vpack.c.bf16 %v69_v38, %v66_v37  ;;  %v67_v46 = vld [vmem:[%s2102_s1 + $0xd0] sm:$0xff]  ;;  %v70_v47 = vld [vmem:[%s2102_s1 + $0xe8] sm:$0xff] }
   0xb   :  { %v72_v48 = vld [vmem:[%s2102_s1 + $0xf8] sm:$0xff]  ;;  %v75_v49 = vld [vmem:[%s2102_s1 + $0x110] sm:$0xff]  ;;  %v1355_v50 = vpack.c.bf16 %v68_v41, %v65_v40  ;;  %v1684_v51 = vld [vmem:[%s2103_s0] sm:$0xff]  ;;  %v1385_v54 = vpack.c.bf16 %v70_v47, %v67_v46 }
   0xc   :  { %1376 = vmatpush3.bf16.msra.mxu1 %v1373_v24  ;;  %v1689_v52 = vld [vmem:[%s2104_s4] sm:$0xf]  ;;  %v71_v53 = vld [vmem:[%s2102_s1 + $0xf0] sm:$0xff]  ;;  %v1357_v57 = vpack.c.bf16 %v75_v49, %v72_v48  ;;  %v74_v58 = vld [vmem:[%s2102_s1 + $0x108] sm:$0xff] }
   0xd   :  { %1348 = vmatpush1.bf16.msra.mxu0 %v1347_v29  ;;  %1378 = vmatprep.subr.bf16.mxu1 %v1377_v31  ;;  %v26_v55 = vrot.slane %v1689_v52, %v25_v43  ;;  %v32_v56 = vrot.slane %v1689_v52, %v31_v44  ;;  %v73_v59 = vld [vmem:[%s2102_s1 + $0x100] sm:$0xff]  ;;  %v76_v60 = vld [vmem:[%s2102_s1 + $0x118] sm:$0xff]  ;;  %v78_v61 = vld [vmem:[%s2102_s1 + $0x128] sm:$0xff]  ;;  %v1359_v0 = vpack.c.bf16 %v74_v58, %v71_v53 }
   0xe   :  { %1350 = vmatprep.subr.bf16.mxu0 %v1349_v33  ;;  %v81_v62 = vld [vmem:[%s2102_s1 + $0x140] sm:$0xff]  ;;  %v80_v2 = vld [vmem:[%s2102_s1 + $0x138] sm:$0xff]  ;;  %v1389_v4 = vpack.c.bf16 %v76_v60, %v73_v59  ;;  %v79_v7 = vld [vmem:[%s2102_s1 + $0x130] sm:$0xff] }
   0xf   :  { %v27_v63 = vmul.f32 %v26_v55, %v1684_v51  ;;  %v77_v1 = vld [vmem:[%s2102_s1 + $0x120] sm:$0xff]  ;;  %v1361_v6 = vpack.c.bf16 %v81_v62, %v78_v61  ;;  %v82_v8 = vld [vmem:[%s2102_s1 + $0x148] sm:$0xff]  ;;  %v84_v10 = vld [vmem:[%s2102_s1 + $0x158] sm:$0xff] }
  0x10   :  { %1380 = vmatpush3.bf16.msra.mxu1 %v1377_v31  ;;  %v1727_v9 = vld [vmem:[%s2103_s0 + $0x8] sm:$0xff]  ;;  %v87_v11 = vld [vmem:[%s2102_s1 + $0x170] sm:$0xff]  ;;  %v1363_v13 = vpack.c.bf16 %v80_v2, %v77_v1  ;;  %v1393_v15 = vpack.c.bf16 %v82_v8, %v79_v7  ;;  %v85_v21 = vld [vmem:[%s2102_s1 + $0x160] sm:$0xff] }
  0x11   :  { %1352 = vmatpush1.bf16.msra.mxu0 %v1351_v39  ;;  %1382 = vmatprep.subr.bf16.mxu1 %v1381_v42  ;;  %v33_v5 = vadd.f32 %v32_v56, %v27_v63  ;;  %v83_v14 = vld [vmem:[%s2102_s1 + $0x150] sm:$0xff]  ;;  %v28_v17 = vmul.f32 %v26_v55, %v1727_v9  ;;  %v1365_v18 = vpack.c.bf16 %v87_v11, %v84_v10  ;;  %v86_v20 = vld [vmem:[%s2102_s1 + $0x168] sm:$0xff]  ;;  %v88_v22 = vld [vmem:[%s2102_s1 + $0x178] sm:$0xff] }
  0x12   :  { %1354 = vmatprep.subr.bf16.mxu0 %v1353_v45  ;;  %v242_v23 = vld [vmem:[%s2105_s3 + $0x8] sm:$0xff]  ;;  %v245_v24 = vld [vmem:[%s2105_s3 + $0x20] sm:$0xff]  ;;  %v1367_v25 = vpack.c.bf16 %v86_v20, %v83_v14  ;;  %v1397_v26 = vpack.c.bf16 %v88_v22, %v85_v21  ;;  %v244_v30 = vld [vmem:[%s2105_s3 + $0x18] sm:$0xff] }
  0x13   :  { %vm35_vm0 = vcmp.ge.f32.partialorder %v33_v5, 0.0  ;;  %v37_v12 = vmul.f32 0.3, %v33_v5  ;;  %v34_v27 = vadd.f32 %v32_v56, %v28_v17  ;;  %v1401_v28 = vpack.c.bf16 %v245_v24, %v242_v23  ;;  %v241_v29 = vld [vmem:[%s2105_s3] sm:$0xff]  ;;  %v248_v31 = vld [vmem:[%s2105_s3 + $0x38] sm:$0xff]  ;;  %v251_v33 = vld [vmem:[%s2105_s3 + $0x50] sm:$0xff] }
  0x14   :  { %1384 = vmatpush3.bf16.msra.mxu1 %v1381_v42  ;;  %v243_v34 = vld [vmem:[%s2105_s3 + $0x10] sm:$0xff]  ;;  %v246_v35 = vld [vmem:[%s2105_s3 + $0x28] sm:$0xff]  ;;  %v1403_v37 = vpack.c.bf16 %v244_v30, %v241_v29  ;;  %v1405_v39 = vpack.c.bf16 %v251_v33, %v248_v31  ;;  %v249_v42 = vld [vmem:[%s2105_s3 + $0x40] sm:$0xff] }
  0x15   :  { %1356 = vmatpush1.bf16.msra.mxu0 %v1355_v50  ;;  %1386 = vmatprep.subr.bf16.mxu1 %v1385_v54  ;;  %v39_v16 = vsel %vm35_vm0, %v33_v5, %v37_v12  ;;  %v38_v36 = vmul.f32 0.3, %v34_v27  ;;  %v247_v38 = vld [vmem:[%s2105_s3 + $0x30] sm:$0xff]  ;;  %vm36_vm1 = vcmp.ge.f32.partialorder %v34_v27, 0.0  ;;  %v250_v40 = vld [vmem:[%s2105_s3 + $0x48] sm:$0xff]  ;;  %v1433_v41 = vpack.c.bf16 %v246_v35, %v243_v34  ;;  %v252_v43 = vld [vmem:[%s2105_s3 + $0x58] sm:$0xff] }
  0x16   :  { %1358 = vmatprep.subr.bf16.mxu0 %v1357_v57  ;;  %1222 = vmatprep.mubr.f32.mxu1 %v39_v16  ;;  %v254_v44 = vld [vmem:[%s2105_s3 + $0x68] sm:$0xff]  ;;  %v257_v45 = vld [vmem:[%s2105_s3 + $0x80] sm:$0xff]  ;;  %v1407_v47 = vpack.c.bf16 %v250_v40, %v247_v38  ;;  %v1437_v49 = vpack.c.bf16 %v252_v43, %v249_v42  ;;  %v256_v53 = vld [vmem:[%s2105_s3 + $0x78] sm:$0xff]  ;;  %v1547_v43 = vmov 0.0|0.0  }
  0x17   :  { %v40_v46 = vsel %vm36_vm1, %v34_v27, %v38_v36  ;;  %v253_v48 = vld [vmem:[%s2105_s3 + $0x60] sm:$0xff]  ;;  %v1409_v50 = vpack.c.bf16 %v257_v45, %v254_v44  ;;  %v258_v55 = vld [vmem:[%s2105_s3 + $0x88] sm:$0xff]  ;;  %v260_v56 = vld [vmem:[%s2105_s3 + $0x98] sm:$0xff]  ;;  %v444_v45 = vand.u32 127, %v23_v19 }
  0x18   :  { %1388 = vmatpush3.bf16.msra.mxu1 %v1385_v54  ;;  %v255_v54 = vld [vmem:[%s2105_s3 + $0x70] sm:$0xff]  ;;  %v1411_v58 = vpack.c.bf16 %v256_v53, %v253_v48  ;;  %v262_v62 = vld [vmem:[%s2105_s3 + $0xa8] sm:$0xff]  ;;  %v261_v63 = vld [vmem:[%s2105_s3 + $0xa0] sm:$0xff] }
  0x19   :  { %1360 = vmatpush1.bf16.msra.mxu0 %v1359_v0  ;;  %1390 = vmatprep.subr.bf16.mxu1 %v1389_v4  ;;  %v263_v57 = vld [vmem:[%s2105_s3 + $0xb0] sm:$0xff]  ;;  %v1441_v60 = vpack.c.bf16 %v258_v55, %v255_v54  ;;  %v264_v0 = vld [vmem:[%s2105_s3 + $0xb8] sm:$0xff]  ;;  %v266_v1 = vld [vmem:[%s2105_s3 + $0xc8] sm:$0xff] }
  0x1a   :  { %1362 = vmatprep.subr.bf16.mxu0 %v1361_v6  ;;  %v259_v59 = vld [vmem:[%s2105_s3 + $0x90] sm:$0xff]  ;;  %v1413_v61 = vpack.c.bf16 %v263_v57, %v260_v56  ;;  %v269_v2 = vld [vmem:[%s2105_s3 + $0xe0] sm:$0xff]  ;;  %v1445_v6 = vpack.c.bf16 %v264_v0, %v261_v63  ;;  %v268_v8 = vld [vmem:[%s2105_s3 + $0xd8] sm:$0xff] }
  0x1b   :  { %v265_v5 = vld [vmem:[%s2105_s3 + $0xc0] sm:$0xff]  ;;  %v1417_v7 = vpack.c.bf16 %v269_v2, %v266_v1  ;;  %v267_v10 = vld [vmem:[%s2105_s3 + $0xd0] sm:$0xff]  ;;  %v270_v11 = vld [vmem:[%s2105_s3 + $0xe8] sm:$0xff] }
  0x1c   :  { %1392 = vmatpush3.bf16.msra.mxu1 %v1389_v4  ;;  %v1415_v4 = vpack.c.bf16 %v262_v62, %v259_v59  ;;  %v272_v12 = vld [vmem:[%s2105_s3 + $0xf8] sm:$0xff]  ;;  %v1419_v14 = vpack.c.bf16 %v268_v8, %v265_v5  ;;  %v273_v20 = vld [vmem:[%s2105_s3 + $0x100] sm:$0xff]  ;;  %v278_v22 = vld [vmem:[%s2105_s3 + $0x128] sm:$0xff] }
  0x1d   :  { %1364 = vmatpush1.bf16.msra.mxu0 %v1363_v13  ;;  %1394 = vmatprep.subr.bf16.mxu1 %v1393_v15  ;;  %v275_v13 = vld [vmem:[%s2105_s3 + $0x110] sm:$0xff]  ;;  %v276_v21 = vld [vmem:[%s2105_s3 + $0x118] sm:$0xff]  ;;  %v281_v23 = vld [vmem:[%s2105_s3 + $0x140] sm:$0xff] }
  0x1e   :  { %1366 = vmatprep.subr.bf16.mxu0 %v1365_v18  ;;  %v1421_v17 = vpack.c.bf16 %v275_v13, %v272_v12  ;;  %v274_v18 = vld [vmem:[%s2105_s3 + $0x108] sm:$0xff]  ;;  %v1425_v27 = vpack.c.bf16 %v281_v23, %v278_v22  ;;  %v279_v29 = vld [vmem:[%s2105_s3 + $0x130] sm:$0xff]  ;;  %v284_v31 = vld [vmem:[%s2105_s3 + $0x158] sm:$0xff] }
  0x1f   :  { %v282_v30 = vld [vmem:[%s2105_s3 + $0x148] sm:$0xff]  ;;  %v287_v33 = vld [vmem:[%s2105_s3 + $0x170] sm:$0xff]  ;;  %v288_v40 = vld [vmem:[%s2105_s3 + $0x178] sm:$0xff] }
  0x20   :  { %1396 = vmatpush3.bf16.msra.mxu1 %v1393_v15  ;;  %v271_v15 = vld [vmem:[%s2105_s3 + $0xf0] sm:$0xff]  ;;  %v1457_v36 = vpack.c.bf16 %v282_v30, %v279_v29  ;;  %v286_v38 = vld [vmem:[%s2105_s3 + $0x168] sm:$0xff]  ;;  %v901_v19 = vld [vmem:[%s2106_s2 + $0x20] sm:$0xff] }
  0x21   :  { %1368 = vmatpush1.bf16.msra.mxu0 %v1367_v25  ;;  %1398 = vmatprep.subr.bf16.mxu1 %v1397_v26  ;;  %v1423_v24 = vpack.c.bf16 %v274_v18, %v271_v15  ;;  %v277_v25 = vld [vmem:[%s2105_s3 + $0x120] sm:$0xff]  ;;  %v283_v35 = vld [vmem:[%s2105_s3 + $0x150] sm:$0xff]  ;;  %v898_v57 = vld [vmem:[%s2106_s2 + $0x8] sm:$0xff] }
  0x22   :  { %1402 = vmatprep.subr.bf16.mxu0 %v1401_v28  ;;  %v280_v28 = vld [vmem:[%s2105_s3 + $0x138] sm:$0xff]  ;;  %v1483_v62 = vpack.c.bf16 %v901_v19, %v898_v57  ;;  %v907_v0 = vld [vmem:[%s2106_s2 + $0x50] sm:$0xff]  ;;  %v913_v8 = vld [vmem:[%s2106_s2 + $0x80] sm:$0xff] }
  0x23   :  { %v1427_v34 = vpack.c.bf16 %v280_v28, %v277_v25  ;;  %v904_v63 = vld [vmem:[%s2106_s2 + $0x38] sm:$0xff]  ;;  %v903_v5 = vld [vmem:[%s2106_s2 + $0x30] sm:$0xff]  ;;  %v909_v12 = vld [vmem:[%s2106_s2 + $0x60] sm:$0xff] }
  0x24   :  { %154 = vmatmul.mubr.f32.vlgmr.msra.gmra.mrb[0].mxu0 %v39_v16  ;;  %1400 = vmatpush3.bf16.msra.mxu1 %v1397_v26  ;;  %v1449_v16 = vpack.c.bf16 %v270_v11, %v267_v10  ;;  %v1453_v26 = vpack.c.bf16 %v276_v21, %v273_v20  ;;  %v912_v13 = vld [vmem:[%s2106_s2 + $0x78] sm:$0xff]  ;;  %v919_v15 = vld [vmem:[%s2106_s2 + $0xb0] sm:$0xff]  ;;  %v918_v20 = vld [vmem:[%s2106_s2 + $0xa8] sm:$0xff] }
  0x25   :  { %159 = vmatprep.mubr.f32.mxu0 %v1546_v3  ;;  %1404 = vmatpush1.bf16.msra.mxu0 %v1403_v37  ;;  %v1429_v37 = vpack.c.bf16 %v287_v33, %v284_v31  ;;  %v915_v18 = vld [vmem:[%s2106_s2 + $0x90] sm:$0xff]  ;;  %v922_v21 = vld [vmem:[%s2106_s2 + $0xc8] sm:$0xff]  ;;  %v925_v22 = vld [vmem:[%s2106_s2 + $0xe0] sm:$0xff] }
  0x26   :  { %1406 = vmatprep.subr.bf16.mxu0 %v1405_v39  ;;  %1434 = vmatprep.subr.bf16.mxu1 %v1433_v41  ;;  %v285_v39 = vld [vmem:[%s2105_s3 + $0x160] sm:$0xff]  ;;  %v1497_v23 = vpack.c.bf16 %v918_v20, %v915_v18  ;;  %v931_v28 = vld [vmem:[%s2106_s2 + $0x110] sm:$0xff]  ;;  %v930_v33 = vld [vmem:[%s2106_s2 + $0x108] sm:$0xff] }
  0x27   :  { %1223 = vmatmul.mubr.f32.vlgmr.msra.gmra.mrb[0].mxu1 %v40_v46  ;;  %v1461_v42 = vpack.c.bf16 %v288_v40, %v285_v39  ;;  %v921_v25 = vld [vmem:[%s2106_s2 + $0xc0] sm:$0xff]  ;;  %v927_v31 = vld [vmem:[%s2106_s2 + $0xf0] sm:$0xff]  ;;  %v926_v57 = vld [vmem:[%s2106_s2 + $0xe8] sm:$0xff] }
  0x28   :  { %160 = vmatmul.mubr.f32.gmra.mrb[2].mxu0 %v40_v46  ;;  %1436 = vmatpush3.bf16.msra.mxu1 %v1433_v41  ;;  %v1431_v41 = vpack.c.bf16 %v286_v38, %v283_v35 }
  0x29   :  { %1408 = vmatpush1.bf16.msra.mxu0 %v1407_v47  ;;  %1438 = vmatprep.subr.bf16.mxu1 %v1437_v49 }
  0x2a   :  { %1410 = vmatprep.subr.bf16.mxu0 %v1409_v50  ;;  %353 = vmatprep.mubr.f32.mxu0 %v1546_v3 }
  0x2b   :  { %1257 = vmatprep.mubr.f32.mxu1 %v1684_v51 }
  0x2c   :  { %1440 = vmatpush3.bf16.msra.mxu1 %v1437_v49 }
  0x2d   :  { %1412 = vmatpush1.bf16.msra.mxu0 %v1411_v58  ;;  %1442 = vmatprep.subr.bf16.mxu1 %v1441_v60 }
  0x2e   :  { %1414 = vmatprep.subr.bf16.mxu0 %v1413_v61  ;;  %v900_v61 = vld [vmem:[%s2106_s2 + $0x18] sm:$0xff] }
  0x30   :  { %1444 = vmatpush3.bf16.msra.mxu1 %v1441_v60  ;;  %v897_v60 = vld [vmem:[%s2106_s2] sm:$0xff] }
  0x31   :  { %1416 = vmatpush1.bf16.msra.mxu0 %v1415_v4  ;;  %1446 = vmatprep.subr.bf16.mxu1 %v1445_v6  ;;  %v1485_v2 = vpack.c.bf16 %v900_v61, %v897_v60  ;;  %v1487_v4 = vpack.c.bf16 %v907_v0, %v904_v63  ;;  %v934_v61 = vld [vmem:[%s2106_s2 + $0x128] sm:$0xff]  ;;  %v933_v0 = vld [vmem:[%s2106_s2 + $0x120] sm:$0xff] }
  0x32   :  { %1418 = vmatprep.subr.bf16.mxu0 %v1417_v7  ;;  %v910_v7 = vld [vmem:[%s2106_s2 + $0x68] sm:$0xff] }
  0x33   :  { %v1491_v11 = vpack.c.bf16 %v913_v8, %v910_v7  ;;  %v940_v7 = vld [vmem:[%s2106_s2 + $0x158] sm:$0xff]  ;;  %v943_v8 = vld [vmem:[%s2106_s2 + $0x170] sm:$0xff] }
  0x34   :  { %1448 = vmatpush3.bf16.msra.mxu1 %v1445_v6  ;;  %v906_v6 = vld [vmem:[%s2106_s2 + $0x48] sm:$0xff] }
  0x35   :  { %1420 = vmatpush1.bf16.msra.mxu0 %v1419_v14  ;;  %1450 = vmatprep.subr.bf16.mxu1 %v1449_v16  ;;  %v1489_v10 = vpack.c.bf16 %v906_v6, %v903_v5  ;;  %v916_v14 = vld [vmem:[%s2106_s2 + $0x98] sm:$0xff]  ;;  %v938_v5 = vld [vmem:[%s2106_s2 + $0x148] sm:$0xff] }
  0x36   :  { %1422 = vmatprep.subr.bf16.mxu0 %v1421_v17  ;;  %v1495_v17 = vpack.c.bf16 %v919_v15, %v916_v14  ;;  %v944_v15 = vld [vmem:[%s2106_s2 + $0x178] sm:$0xff] }
  0x38   :  { %1452 = vmatpush3.bf16.msra.mxu1 %v1449_v16  ;;  %v1493_v16 = vpack.c.bf16 %v912_v13, %v909_v12  ;;  %v942_v12 = vld [vmem:[%s2106_s2 + $0x168] sm:$0xff]  ;;  %v941_v13 = vld [vmem:[%s2106_s2 + $0x160] sm:$0xff] }
  0x39   :  { %1424 = vmatpush1.bf16.msra.mxu0 %v1423_v24  ;;  %1454 = vmatprep.subr.bf16.mxu1 %v1453_v26  ;;  %v1499_v24 = vpack.c.bf16 %v925_v22, %v922_v21 }
  0x3a   :  { %1426 = vmatprep.subr.bf16.mxu0 %v1425_v27  ;;  %v928_v27 = vld [vmem:[%s2106_s2 + $0xf8] sm:$0xff] }
  0x3b   :  { %v1503_v30 = vpack.c.bf16 %v931_v28, %v928_v27 }
  0x3c   :  { %1456 = vmatpush3.bf16.msra.mxu1 %v1453_v26  ;;  %v924_v26 = vld [vmem:[%s2106_s2 + $0xd8] sm:$0xff] }
  0x3d   :  { %1428 = vmatpush1.bf16.msra.mxu0 %v1427_v34  ;;  %1458 = vmatprep.subr.bf16.mxu1 %v1457_v36  ;;  %v1501_v29 = vpack.c.bf16 %v924_v26, %v921_v25  ;;  %v1505_v34 = vpack.c.bf16 %v930_v33, %v927_v31 }
  0x3e   :  { %1430 = vmatprep.subr.bf16.mxu0 %v1429_v37 }
  0x40   :  { %1460 = vmatpush3.bf16.msra.mxu1 %v1457_v36 }
  0x41   :  { %1432 = vmatpush1.bf16.msra.mxu0 %v1431_v41  ;;  %1462 = vmatprep.subr.bf16.mxu1 %v1461_v42 }
  0x42   :  { %1468 = vmatprep.subr.bf16.mxu0 %v1547_v43 }
  0x44   :  { %354 = vmatmul.mubr.f32.vlgmr.msra.gmra.mrb[4].mxu0 %v1684_v51  ;;  %1464 = vmatpush3.bf16.msra.mxu1 %v1461_v42  ;;  %v445_v51 = vmul.u32 2, %v1644_v32 }
  0x45   :  { %359 = vmatprep.mubr.f32.mxu0 %v1546_v3  ;;  %1465 = vmatprep.subr.bf16.mxu1 %v1547_v43 }
  0x46   :  { %v446_v46 = vadd.s32 4294967295, %v445_v51  ;;  %v740_v50 = vadd.s32 1, %v445_v51  ;;  %vm450_vm4 = vcmp.eq.s32.totalorder %v444_v45, %v445_v51 }
  0x47   :  { %1258 = vmatmul.mubr.f32.vlgmr.msra.gmra.mrb[2].mxu1 %v1727_v9  ;;  %v1918_v59 = vsel %vm450_vm4, 1.0, %v1546_v3 }
  0x48   :  { %360 = vmatmul.mubr.f32.gmra.mrb[6].mxu0 %v1727_v9  ;;  %1264 = vmatprep.mubr.msk.f32.mxu1 %vm1548_vm2, %v1546_v3  ;;  %vm447_vm3 = vcmp.eq.s32.totalorder %v444_v45, %v446_v46  ;;  %vm741_vm6 = vcmp.eq.s32.totalorder %v444_v45, %v740_v50  ;;  %v902_v45 = vld [vmem:[%s2106_s2 + $0x28] sm:$0xff] }
  0x49   :  { %1271 = vmatprep.mubr.msk.f32.mxu0 %vm1548_vm2, %v1546_v3  ;;  %v1914_v58 = vsel %vm447_vm3, 1.0, %v1546_v3  ;;  %v1938_v1 = vsel %vm741_vm6, 1.0, %v1546_v3  ;;  %v914_v50 = vld [vmem:[%s2106_s2 + $0x88] sm:$0xff] }
  0xf7   :  { %v155_v44 = vpop.f32.mrb[0].mxu0 }
  0xf8   :  { %v157_v47 = vpop.f32.mrb[1].mxu0 }
  0xfa   :  { %v1224_v9 = vpop.f32.mrb[0].mxu1 }
  0xfb   :  { %v161_v48 = vpop.f32.mrb[2].mxu0  ;;  %v232_v49 = vpop.f32.mrb[1].mxu1 }
  0xfc   :  { %v1469_v53 = vpack.c.bf16 %v161_v48, %v155_v44  ;;  %v163_v54 = vpop.f32.mrb[3].mxu0  ;;  %v1478_v55 = vpack.c.bf16 %v1224_v9, %v232_v49  ;;  %v899_v44 = vld [vmem:[%s2106_s2 + $0x10] sm:$0xff]  ;;  %v908_v9 = vld [vmem:[%s2106_s2 + $0x58] sm:$0xff] }
  0xfd   :  { %v1466_v56 = vpack.c.bf16 %v163_v54, %v157_v47  ;;  %v1516_v46 = vpack.c.bf16 %v902_v45, %v899_v44  ;;  %v905_v47 = vld [vmem:[%s2106_s2 + $0x40] sm:$0xff]  ;;  %v911_v49 = vld [vmem:[%s2106_s2 + $0x70] sm:$0xff] }
  0xfe   :  { %1470 = vmatpush3.bf16.msra.mxu0 %v1469_v53  ;;  %v1519_v48 = vpack.c.bf16 %v908_v9, %v905_v47  ;;  %v1522_v53 = vpack.c.bf16 %v914_v50, %v911_v49  ;;  %v917_v54 = vld [vmem:[%s2106_s2 + $0xa0] sm:$0xff] }
  0xff   :  { %1467 = vmatpush3.bf16.msra.mxu1 %v1466_v56  ;;  %1477 = vmatprep.subr.bf16.mxu0 %v1547_v43  ;;  %v923_v56 = vld [vmem:[%s2106_s2 + $0xd0] sm:$0xff] }
 0x100   :  { %1471 = vmatprep.subr.bf16.mxu1 %v1547_v43  ;;  %v1528_v19 = vpack.c.bf16 %v926_v57, %v923_v56 }
 0x101   :  { %1272 = vmatmul.mubr.msk.f32.vlgmr.msra.gmra.mrb[8].mxu0 %vm453_vm5, %v1914_v58 }
 0x102   :  { %1479 = vmatpush3.bf16.msra.mxu0 %v1478_v55  ;;  %1265 = vmatmul.mubr.msk.f32.vlgmr.msra.gmra.mrb[4].mxu1 %vm453_vm5, %v1918_v59 }
 0x103   :  { %1292 = vmatprep.mubr.msk.f32.mxu0 %vm1548_vm2, %v1546_v3  ;;  %1278 = vmatprep.mubr.msk.f32.mxu1 %vm1548_vm2, %v1546_v3 }
 0x104   :  { %1484 = vmatprep.subr.bf16.mxu0 %v1483_v62  ;;  %v937_v62 = vld [vmem:[%s2106_s2 + $0x140] sm:$0xff] }
 0x105   :  { %1293 = vmatmul.mubr.msk.f32.vlgmr.msra.gmra.mrb[10].mxu0 %vm453_vm5, %v1938_v1  ;;  %v1507_v63 = vpack.c.bf16 %v937_v62, %v934_v61 }
 0x106   :  { %1486 = vmatpush1.bf16.msra.mxu0 %v1485_v2  ;;  %1009 = vmatprep.mubr.f32.mxu0 %v1546_v3  ;;  %v935_v2 = vld [vmem:[%s2106_s2 + $0x130] sm:$0xff] }
 0x107   :  { %1488 = vmatprep.subr.bf16.mxu0 %v1487_v4  ;;  %v1534_v6 = vpack.c.bf16 %v938_v5, %v935_v2 }
 0x10a   :  { %1490 = vmatpush1.bf16.msra.mxu0 %v1489_v10  ;;  %v1511_v10 = vpack.c.bf16 %v943_v8, %v940_v7 }
 0x10b   :  { %1492 = vmatprep.subr.bf16.mxu0 %v1491_v11  ;;  %v939_v11 = vld [vmem:[%s2106_s2 + $0x150] sm:$0xff] }
 0x10c   :  { %v1513_v14 = vpack.c.bf16 %v942_v12, %v939_v11 }
 0x10e   :  { %1494 = vmatpush1.bf16.msra.mxu0 %v1493_v16  ;;  %v1537_v16 = vpack.c.bf16 %v944_v15, %v941_v13 }
 0x10f   :  { %1496 = vmatprep.subr.bf16.mxu0 %v1495_v17  ;;  %v891_v17 = vsub.s32 2, %v1644_v32 }
 0x112   :  { %1498 = vmatpush1.bf16.msra.mxu0 %v1497_v23 }
 0x113   :  { %1500 = vmatprep.subr.bf16.mxu0 %v1499_v24  ;;  %v892_v24 = vrot.slane %v1689_v52, %v891_v17 }
 0x116   :  { %1502 = vmatpush1.bf16.msra.mxu0 %v1501_v29 }
 0x117   :  { %v355_v35 = vpop.f32.mrb[4].mxu0  ;;  %1504 = vmatprep.subr.bf16.mxu0 %v1503_v30 }
 0x118   :  { %v357_v36 = vpop.f32.mrb[5].mxu0 }
 0x11a   :  { %v1259_v37 = vpop.f32.mrb[2].mxu1  ;;  %1506 = vmatpush1.bf16.msra.mxu0 %v1505_v34 }
 0x11b   :  { %v361_v38 = vpop.f32.mrb[6].mxu0  ;;  %v432_v39 = vpop.f32.mrb[3].mxu1  ;;  %1508 = vmatprep.subr.bf16.mxu0 %v1507_v63 }
 0x11c   :  { %v1475_v40 = vpack.c.bf16 %v361_v38, %v355_v35  ;;  %v363_v41 = vpop.f32.mrb[7].mxu0  ;;  %v1481_v42 = vpack.c.bf16 %v1259_v37, %v432_v39  ;;  %v1101_v35 = vsub.s32 3, %v1644_v32 }
 0x11d   :  { %v1472_v51 = vpack.c.bf16 %v363_v41, %v357_v36 }
 0x11f   :  { %1473 = vmatpush3.bf16.msra.mxu1 %v1472_v51 }
 0x120   :  { %1474 = vmatprep.subr.bf16.mxu1 %v1547_v43 }
 0x122   :  { %1279 = vmatmul.mubr.msk.f32.vlgmr.msra.gmra.mrb[6].mxu1 %vm453_vm5, %v1918_v59  ;;  %v932_v59 = vld [vmem:[%s2106_s2 + $0x118] sm:$0xff] }
 0x123   :  { %1476 = vmatpush3.bf16.msra.mxu1 %v1475_v40  ;;  %1285 = vmatprep.mubr.msk.f32.mxu1 %vm1548_vm2, %v1546_v3 }
 0x124   :  { %1480 = vmatprep.subr.bf16.mxu1 %v1547_v43 }
 0x12a   :  { %1286 = vmatmul.mubr.msk.f32.vlgmr.msra.gmra.mrb[6].mxu1 %vm453_vm5, %v1914_v58  ;;  %v929_v58 = vld [vmem:[%s2106_s2 + $0x100] sm:$0xff] }
 0x12b   :  { %1482 = vmatpush3.bf16.msra.mxu1 %v1481_v42  ;;  %1299 = vmatprep.mubr.msk.f32.mxu1 %vm1548_vm2, %v1546_v3  ;;  %v1531_v60 = vpack.c.bf16 %v932_v59, %v929_v58  ;;  %v1102_v42 = vrot.slane %v1689_v52, %v1101_v35 }
 0x12c   :  { %1515 = vmatprep.subr.bf16.mxu1 %v1547_v43 }
 0x132   :  { %1300 = vmatmul.mubr.msk.f32.vlgmr.msra.gmra.mrb[6].mxu1 %vm453_vm5, %v1938_v1  ;;  %v936_v1 = vld [vmem:[%s2106_s2 + $0x138] sm:$0xff] }
 0x133   :  { %1517 = vmatpush3.bf16.msra.mxu1 %v1516_v46  ;;  %1334 = vmatprep.mubr.msk.f32.mxu1 %vm1548_vm2, %v1546_v3  ;;  %v920_v3 = vld [vmem:[%s2106_s2 + $0xb8] sm:$0xff]  ;;  %v1509_v4 = vpack.c.bf16 %v936_v1, %v933_v0 }
 0x134   :  { %1518 = vmatprep.subr.bf16.mxu1 %v1547_v43  ;;  %v1525_v55 = vpack.c.bf16 %v920_v3, %v917_v54 }
 0x135   :  { %1510 = vmatpush1.bf16.msra.mxu0 %v1509_v4 }
 0x136   :  { %1512 = vmatprep.subr.bf16.mxu0 %v1511_v10 }
 0x137   :  { %1520 = vmatpush3.bf16.msra.mxu1 %v1519_v48 }
 0x138   :  { %1521 = vmatprep.subr.bf16.mxu1 %v1547_v43 }
 0x139   :  { %1514 = vmatpush1.bf16.msra.mxu0 %v1513_v14 }
 0x13b   :  { %1523 = vmatpush3.bf16.msra.mxu1 %v1522_v53 }
 0x13c   :  { %1524 = vmatprep.subr.bf16.mxu1 %v1547_v43 }
 0x13f   :  { %1526 = vmatpush3.bf16.msra.mxu1 %v1525_v55 }
 0x140   :  { %1527 = vmatprep.subr.bf16.mxu1 %v1547_v43 }
 0x143   :  { %1529 = vmatpush3.bf16.msra.mxu1 %v1528_v19 }
 0x144   :  { %1530 = vmatprep.subr.bf16.mxu1 %v1547_v43 }
 0x147   :  { %1532 = vmatpush3.bf16.msra.mxu1 %v1531_v60 }
 0x148   :  { %1533 = vmatprep.subr.bf16.mxu1 %v1547_v43 }
 0x14b   :  { %1535 = vmatpush3.bf16.msra.mxu1 %v1534_v6 }
 0x14c   :  { %1536 = vmatprep.subr.bf16.mxu1 %v1547_v43 }
 0x14f   :  { %1538 = vmatpush3.bf16.msra.mxu1 %v1537_v16 }
 0x1d4   :  { %v596_v18 = vpop.f32.mrb[8].mxu0 }
 0x1d5   :  { %v523_v20 = vpop.f32.mrb[4].mxu1  ;;  %v1273_v21 = vpop.f32.mrb[9].mxu0 }
 0x1d6   :  { %v597_v22 = vadd.f32 %v596_v18, %v523_v20  ;;  %v1266_v23 = vpop.f32.mrb[5].mxu1 }
 0x1d8   :  { %v813_v25 = vpop.f32.mrb[10].mxu0 }
 0x1d9   :  { %v817_v43 = vadd.f32 %v813_v25, %v597_v22  ;;  %v1294_v26 = vpop.f32.mrb[11].mxu0 }
 0x1db   :  { %v893_v27 = vadd.f32 %v892_v24, %v817_v43 }
 0x1dd   :  { %v895_v28 = vmul.f32 0.3, %v893_v27  ;;  %vm894_vm7 = vcmp.ge.f32.partialorder %v893_v27, 0.0 }
 0x1df   :  { %v896_v29 = vsel %vm894_vm7, %v893_v27, %v895_v28 }
 0x1e0   :  { %1010 = vmatmul.mubr.f32.vlgmr.msra.gmra.mrb[12].mxu0 %v896_v29  ;;  %1335 = vmatmul.mubr.f32.vlgmr.msra.gmra.mrb[8].mxu1 %v896_v29 }
 0x205   :  { %v884_v30 = vpop.f32.mrb[6].mxu1 }
 0x206   :  { %v1301_v31 = vpop.f32.mrb[7].mxu1 }
 0x2b3   :  { %v1011_v33 = vpop.f32.mrb[12].mxu0  ;;  %v1082_v34 = vpop.f32.mrb[8].mxu1 }
 0x2b4   :  { %v1087_v36 = vrot.slane %v1011_v33, 7  ;;  %v1094_v37 = vrot.slane %v1082_v34, 1  ;;  %v1013_v38 = vpop.f32.mrb[13].mxu0  ;;  %v1336_v39 = vpop.f32.mrb[9].mxu1 }
 0x2b6   :  { %v1090_v40 = vsel %vm1089_vm8, 0.0, %v1087_v36  ;;  %v1097_v51 = vsel %vm1096_vm9, %v1094_v37, 0.0 }
 0x2b7   :  { %v1092_v41 = vadd.f32 %v1090_v40, %v1013_v38 }
 0x2b9   :  { %v1098_v44 = vadd.f32 %v1097_v51, %v1092_v41 }
 0x2bb   :  { %v1103_v45 = vadd.f32 %v1102_v42, %v1098_v44 }
 0x2bd   :  { %v1104_v46 = vadd.f32 %v1103_v45, %v884_v30 }
 0x2bf   :  { %1105 = vst [vmem:[%s2107_s5] sm:$0xff] %v1104_v46 }

</bundles_post_ra>
